<compile_context>
chip_gen: v6e
topology: v6e:2x2x1
jax: 0.10.0
libtpu: 0.0.40
codegen_flags: <defaults>
</compile_context>

<pallas_src>
import functools

import jax
import jax.numpy as jnp
from jax.experimental import pallas as pl
from jax.experimental.pallas import tpu as pltpu


def _focal_loss_kernel(logits_ref, target_ref, out_ref, *,
                       gamma, n_rows, tile_n, need_mask):
    """One (TILE_N, C) tile -> add its focal-loss partial sum into out_ref.

    logits_ref : (TILE_N, C) input dtype, VMEM
    target_ref : (TILE_N, 1) int32, VMEM
    out_ref    : (8, 128) float32, VMEM, resident accumulator (every element
                 holds the running total; wrapper reads [0, 0]).
    """
    @pl.when(pl.program_id(0) == 0)
    def _init():
        out_ref[...] = jnp.zeros_like(out_ref)

    x = logits_ref[...].astype(jnp.float32)        # upcast in-vreg (VPU, free)
    t = target_ref[...]                            # (TILE_N, 1) int32

    # --- numerically-stable log-softmax pieces (no full log_probs temp) -----
    m = jnp.max(x, axis=-1, keepdims=True)         # (TILE_N, 1)
    z = x - m                                      # (TILE_N, C)
    lse = jnp.log(jnp.sum(jnp.exp(z), axis=-1, keepdims=True))  # (TILE_N, 1)

    # gather z at the target class via an iota mask (no dynamic gather on TPU)
    col = jax.lax.broadcasted_iota(jnp.int32, x.shape, 1)
    z_t = jnp.sum(jnp.where(col == t, z, 0.0), axis=-1, keepdims=True)

    ce = lse - z_t                                 # -log p_t == CE(red='none')

    # --- focal weighting: (1 - p)^gamma * ce, p = exp(-ce) ------------------
    p = jnp.exp(-ce)
    w = 1.0 - p
    g = float(gamma)
    if g == int(g) and int(g) >= 0:
        ig = int(g)
        if ig == 0:
            wg = jnp.ones_like(w)
        else:
            wg = w                                  # start from w, gamma-1 muls
            for _ in range(ig - 1):
                wg = wg * w
    else:
        wg = w ** jnp.float32(gamma)               # non-integer gamma: EUP pow
    loss = wg * ce                                 # (TILE_N, 1)

    if need_mask:                                  # ragged last tile: drop pads
        row = jax.lax.broadcasted_iota(jnp.int32, loss.shape, 0)
        valid = (pl.program_id(0) * tile_n + row) < n_rows
        loss = jnp.where(valid, loss, 0.0)

    partial = jnp.sum(loss)
    out_ref[...] = out_ref[...] + partial          # scalar broadcast-add


def focal_loss(logits, target, gamma=2, eps=1e-07):
    """JAX/Pallas equivalent of Focal_loss.forward(input, target).

    logits : (N, C) float array (any float dtype; upcast inside the kernel)
    target : (N,)   int array of class indices in [0, C)
    returns: scalar float32 mean focal loss
    """
    del eps  # defined in the PyTorch module but never used in forward
    n, c = logits.shape
    itemsize = jnp.dtype(logits.dtype).itemsize
    target2d = target.astype(jnp.int32).reshape(n, 1)

    # --- TILE_N: ~2 MiB of native-dtype logits per tile, sublane-aligned -----
    align = {1: 32, 2: 16, 4: 8}.get(itemsize, 8)
    target_tile_bytes = 2 * 1024 * 1024
    max_rows = max(align, target_tile_bytes // max(1, c * itemsize))
    if n <= max_rows:
        tile_n = n                                  # single full block
    else:
        tile_n = max(align, (max_rows // align) * align)
    num_tiles = pl.cdiv(n, tile_n)
    need_mask = (num_tiles * tile_n) != n

    # --- VMEM budget: inputs are double-buffered; f32 temps dominate ---------
    tile_native = tile_n * c * itemsize
    tile_f32 = tile_n * c * 4
    vmem_est = (2 * tile_native                     # double-buffered logits
                + 2 * tile_n * 4                    # double-buffered targets
                + 6 * tile_f32                      # f32 upcast + temporaries
                + 8 * 128 * 4                       # resident accumulator
                + (2 << 20))                        # Mosaic internal headroom
    vmem_limit = int(min(max(vmem_est, 32 << 20), 56 << 20))

    kernel = functools.partial(
        _focal_loss_kernel,
        gamma=gamma, n_rows=n, tile_n=tile_n, need_mask=need_mask)

    cost = pl.CostEstimate(
        flops=int(8 * n * c),
        transcendentals=int(n * (c + 2)),
        bytes_accessed=int(n * c * itemsize + n * 4 + 8 * 128 * 4),
    )

    acc = pl.pallas_call(
        kernel,
        out_shape=jax.ShapeDtypeStruct((8, 128), jnp.float32),
        grid_spec=pltpu.PrefetchScalarGridSpec(
            num_scalar_prefetch=0,
            grid=(num_tiles,),
            in_specs=[
                pl.BlockSpec((tile_n, c), lambda i: (i, 0)),
                pl.BlockSpec((tile_n, 1), lambda i: (i, 0)),
            ],
            out_specs=pl.BlockSpec((8, 128), lambda i: (0, 0)),
        ),
        compiler_params=pltpu.CompilerParams(
            dimension_semantics=("arbitrary",),
            vmem_limit_bytes=vmem_limit),
        cost_estimate=cost,
    )(logits, target2d)

    return acc[0, 0] / jnp.float32(n)


def _focal_loss_ref(logits, target, gamma=2):
    """Pure-JAX reference for correctness checking."""
    x = logits.astype(jnp.float32)
    log_probs = jax.nn.log_softmax(x, axis=-1)
    log_pt = jnp.take_along_axis(
        log_probs, target[:, None].astype(jnp.int32), axis=-1)[:, 0]
    ce = -log_pt
    p = jnp.exp(-ce)
    return jnp.mean((1.0 - p) ** gamma * ce)


if __name__ == "__main__":
    key = jax.random.PRNGKey(0)
    k1, k2, k3, k4 = jax.random.split(key, 4)

    # --- case 1: small f32, single tile --------------------------------------
    N1, C1 = 8, 32
    logits1 = jax.random.normal(k1, (N1, C1), dtype=jnp.float32)
    target1 = jax.random.randint(k2, (N1,), 0, C1, dtype=jnp.int32)

    loss1 = jax.block_until_ready(focal_loss(logits1, target1, gamma=2))
    ref1 = jax.block_until_ready(_focal_loss_ref(logits1, target1, gamma=2))
    assert jnp.allclose(loss1, ref1, rtol=1e-5, atol=1e-6), (loss1, ref1)

    # --- case 2: bf16, larger N (exercises mask path / accumulator) ----------
    N2, C2 = 300, 128
    logits2 = jax.random.normal(k3, (N2, C2), dtype=jnp.bfloat16)
    target2 = jax.random.randint(k4, (N2,), 0, C2, dtype=jnp.int32)

    loss2 = jax.block_until_ready(focal_loss(logits2, target2, gamma=2))
    ref2 = jax.block_until_ready(_focal_loss_ref(logits2, target2, gamma=2))
    assert jnp.allclose(loss2, ref2, rtol=1e-4, atol=1e-5), (loss2, ref2)

    print("KERNEL_OK")
</pallas_src>

<mosaic_0001>
module attributes {stable_mosaic.version = 11 : i64} {
  func.func @_focal_loss_kernel(%arg0: i32, %arg1: memref<8x32xf32, #tpu.memory_space<vmem>>, %arg2: memref<8x1xi32, #tpu.memory_space<vmem>>, %arg3: memref<8x128xf32, #tpu.memory_space<vmem>>) attributes {dimension_semantics = [#tpu.dimension_semantics<arbitrary>], iteration_bounds = array<i64: 1>, scalar_prefetch = 0 : i64, scratch_operands = 0 : i64, tpu.core_type = #tpu.core_type<tc>, window_params = [{transform_indices = @transform_0, window_bounds = array<i64: 8, 32>}, {transform_indices = @transform_1, window_bounds = array<i64: 8, 1>}, {pipeline_mode = #tpu.pipeline_mode<synchronous>, transform_indices = @transform_2, window_bounds = array<i64: 8, 128>}]} {
    %c0_i32 = arith.constant 0 : i32
    %0 = arith.cmpi eq, %arg0, %c0_i32 : i32
    %1 = arith.extui %0 : i1 to i32
    %c0_i32_0 = arith.constant 0 : i32
    %2 = arith.cmpi ne, %1, %c0_i32_0 : i32
    scf.if %2 {
      %cst_14 = arith.constant 0.000000e+00 : f32
      %36 = vector.broadcast %cst_14 : f32 to vector<8x128xf32>
      %c0_15 = arith.constant 0 : index
      %c0_16 = arith.constant 0 : index
      %37 = vector.load %arg3[%c0_15, %c0_16] : memref<8x128xf32, #tpu.memory_space<vmem>>, vector<8x128xf32>
      tpu.vector_store %arg3[%c0_15, %c0_16], %36 {strides = array<i32>} : memref<8x128xf32, #tpu.memory_space<vmem>>, vector<8x128xf32>,
    } else {
    }
    %c0 = arith.constant 0 : index
    %c0_1 = arith.constant 0 : index
    %3 = vector.load %arg1[%c0, %c0_1] : memref<8x32xf32, #tpu.memory_space<vmem>>, vector<8x32xf32>
    %c0_2 = arith.constant 0 : index
    %c0_3 = arith.constant 0 : index
    %4 = vector.load %arg2[%c0_2, %c0_3] : memref<8x1xi32, #tpu.memory_space<vmem>>, vector<8x1xi32>
    %cst = arith.constant dense<0xFF800000> : vector<8xf32>
    %5 = vector.multi_reduction <maximumf>, %3, %cst [1] : vector<8x32xf32> to vector<8xf32>
    %6 = vector.shape_cast %5 : vector<8xf32> to vector<8x1xf32>
    %7 = vector.broadcast %6 : vector<8x1xf32> to vector<8x32xf32>
    %8 = arith.subf %3, %7 : vector<8x32xf32>
    %9 = math.exp %8 : vector<8x32xf32>
    %cst_4 = arith.constant dense<0.000000e+00> : vector<8xf32>
    %10 = vector.multi_reduction <add>, %9, %cst_4 [1] : vector<8x32xf32> to vector<8xf32>
    %11 = vector.shape_cast %10 : vector<8xf32> to vector<8x1xf32>
    %12 = math.log %11 : vector<8x1xf32>
    %13 = tpu.iota {dimensions = array<i32: 1>} : vector<8x32xi32>
    %14 = vector.broadcast %4 : vector<8x1xi32> to vector<8x32xi32>
    %15 = arith.cmpi eq, %13, %14 : vector<8x32xi32>
    %cst_5 = arith.constant 0.000000e+00 : f32
    %16 = vector.broadcast %cst_5 : f32 to vector<8x32xf32>
    %17 = arith.select %15, %8, %16 : vector<8x32xi1>, vector<8x32xf32>
    %cst_6 = arith.constant dense<0.000000e+00> : vector<8xf32>
    %18 = vector.multi_reduction <add>, %17, %cst_6 [1] : vector<8x32xf32> to vector<8xf32>
    %19 = vector.shape_cast %18 : vector<8xf32> to vector<8x1xf32>
    %20 = arith.subf %12, %19 : vector<8x1xf32>
    %cst_7 = arith.constant 0.000000e+00 : f32
    %21 = vector.broadcast %cst_7 : f32 to vector<8x1xf32>
    %22 = arith.subf %21, %20 : vector<8x1xf32>
    %23 = math.exp %22 : vector<8x1xf32>
    %cst_8 = arith.constant 1.000000e+00 : f32
    %24 = vector.broadcast %cst_8 : f32 to vector<8x1xf32>
    %25 = arith.subf %24, %23 : vector<8x1xf32>
    %26 = arith.mulf %25, %25 : vector<8x1xf32>
    %27 = arith.mulf %26, %20 : vector<8x1xf32>
    %28 = vector.shape_cast %27 : vector<8x1xf32> to vector<1x8x1xf32>
    %cst_9 = arith.constant dense<0.000000e+00> : vector<1xf32>
    %29 = vector.multi_reduction <add>, %28, %cst_9 [1, 2] : vector<1x8x1xf32> to vector<1xf32>
    %30 = vector.shape_cast %29 : vector<1xf32> to vector<1x1x1xf32>
    %31 = vector.extract %30[0, 0, 0] : f32 from vector<1x1x1xf32>
    %c0_10 = arith.constant 0 : index
    %c0_11 = arith.constant 0 : index
    %32 = vector.load %arg3[%c0_10, %c0_11] : memref<8x128xf32, #tpu.memory_space<vmem>>, vector<8x128xf32>
    %33 = vector.broadcast %31 : f32 to vector<8x128xf32>
    %34 = arith.addf %32, %33 : vector<8x128xf32>
    %c0_12 = arith.constant 0 : index
    %c0_13 = arith.constant 0 : index
    %35 = vector.load %arg3[%c0_12, %c0_13] : memref<8x128xf32, #tpu.memory_space<vmem>>, vector<8x128xf32>
    tpu.vector_store %arg3[%c0_12, %c0_13], %34 {strides = array<i32>} : memref<8x128xf32, #tpu.memory_space<vmem>>, vector<8x128xf32>,
    return
  }
  func.func @transform_0(%arg0: i32) -> (i32, i32) {
    %c0_i32 = arith.constant 0 : i32
    %c0_i32_0 = arith.constant 0 : i32
    return %arg0, %c0_i32 : i32, i32
  }
  func.func @transform_1(%arg0: i32) -> (i32, i32) {
    %c0_i32 = arith.constant 0 : i32
    %c0_i32_0 = arith.constant 0 : i32
    return %arg0, %c0_i32 : i32, i32
  }
  func.func @transform_2(%arg0: i32) -> (i32, i32) {
    %c0_i32 = arith.constant 0 : i32
    %c0_i32_0 = arith.constant 0 : i32
    %c0_i32_1 = arith.constant 0 : i32
    return %c0_i32, %c0_i32_0 : i32, i32
  }
}

</mosaic_0001>

<bundles_post_ra>
// kernel: tpu_custom_call.1
= control target key start
LH: loop header
LB: loop body
LE: loop exit
PB: predicated region body
PF: predicated region fallthrough
CT: control target
= control target key end

     0   :  { %vm19_vm0 = vcmask 261120   ;;  %s140_s0 = inlined_call_operand.vmem [shape: f32[8,32], index: 0, kind: input, shape index: {}]   ;;  %s141_s1 = inlined_call_operand.vmem [shape: s32[8,1], index: 1, kind: input, shape index: {}]   ;;  %s142_s2 = inlined_call_operand.hbm [shape: f32[8,128], index: 2, kind: output, shape index: {}]  }
   0x1   :  { %v17_v0 = vld [vmem:[%s140_s0] sm:$0xff] }
   0x2   :  { %7 = vsyncpa [#allocation3], 0  ;;  %v20_v1 = vsel %vm19_vm0, %v17_v0, -inf  ;;  %v111_v2 = vmov 0   ;;  %v18_v3 = vld [vmem:[%s141_s1] sm:$0xff]  ;;  %v31_v7 = vlaneseq  ;;  %vm48_vm2 = vcmask 7168  }
   0x3   :  { %82 = vset.pattern.permute.xlu0 %v111_v2  ;;  %s112_s0 = smov [#allocation2]  }
   0x4   :  { %21 = vmax.xlane.f32.xlu0 %v20_v1  ;;  %v32_v8 = vand.u32 127, %v31_v7  ;;  %s69_s1 = sshll.u32 %s112_s0, 4  ;;  %s70_s1 = int_to_ptr.vmem [resolvable:$true] %s69_s1 }
   0x5   :  { %s89_s14 = scalar_lea.vmem %s70_s1, 128  ;;  %p94_p1 = scmp.lt.s32.totalorder %s70_s1, %s70_s1 }
   0x6   :  { %p90_p0 = scmp.ne.s32.totalorder %s70_s1, %s89_s14  ;;  %p95_p2 = scmp.lt.s32.totalorder %s89_s14, %s89_s14 }
   0x8   :  { %p96_p3 = por %p95_p2, %p94_p1 }
   0xa   :  { %p97_p4 = pnand %p96_p3, %p90_p0 }
  0x1a   :  { %34 = vperm.xlu0 %82, %v18_v3  }
  0x8d   :  { %v22_v4 = vpop.xlane.xlu0 %21 }
  0x8e   :  { %v23_v5 = vsub.f32 %v17_v0, %v22_v4 }
  0x90   :  { %v24_v6 = vmul.f32 1.442695, %v23_v5 }
  0x92   :  { %83 = vpow2.f32 %v24_v6 }
  0x95   :  { %v35_v9 = vpop.permute.xlu0 %34 }
  0x96   :  { %vm36_vm1 = vcmp.eq.s32.totalorder %v32_v8, %v35_v9 }
  0x97   :  { %v37_v12 = vsel %vm36_vm1, %v23_v5, 0.0 }
  0x98   :  { %v38_v13 = vsel %vm19_vm0, %v37_v12, 0.0 }
  0x9f   :  { %v84_v10 = vpop.eup %83 }
  0xa0   :  { %v26_v11 = vsel %vm19_vm0, %v84_v10, 0.0 }
  0xa1   :  { %27 = vadd.xlane.f32.xlu1 %v26_v11 }
  0xa5   :  { %39 = vadd.xlane.f32.xlu1 %v38_v13 }
 0x12a   :  { %v28_v14 = vpop.xlane.xlu1 %27 }
 0x12b   :  { %85 = vlog2.f32 %v28_v14 }
 0x12e   :  { %v40_v17 = vpop.xlane.xlu1 %39 }
 0x138   :  { %v86_v15 = vpop.eup %85 }
 0x139   :  { %v30_v16 = vmul.f32 0.6931472, %v86_v15 }
 0x13b   :  { %v41_v18 = vsub.f32 %v30_v16, %v40_v17 }
 0x13d   :  { %v42_v19 = vsub.f32 0.0, %v41_v18 }
 0x13f   :  { %v43_v20 = vmul.f32 1.442695, %v42_v19 }
 0x141   :  { %87 = vpow2.f32 %v43_v20 }
 0x14e   :  { %v88_v21 = vpop.eup %87 }
 0x14f   :  { %v45_v22 = vsub.f32 1.0, %v88_v21 }
 0x151   :  { %v46_v23 = vmul.f32 %v45_v22, %v45_v22 }
 0x153   :  { %v47_v24 = vmul.f32 %v46_v23, %v41_v18 }
 0x155   :  { %v49_v25 = vsel %vm48_vm2, %v47_v24, 0.0 }
 0x156   :  { %50 = vadd.xlane.f32.xlu1 %v49_v25 }
 0x1df   :  { %v51_v26 = vpop.xlane.xlu1 %50 }
 0x1e0   :  { %v52_v27 = vrot.slane %v51_v26, 4 }
 0x1e2   :  { %v53_v28 = vadd.f32 %v52_v27, %v51_v26 }
 0x1e4   :  { %v54_v29 = vrot.slane %v53_v28, 2 }
 0x1e6   :  { %v55_v30 = vadd.f32 %v54_v29, %v53_v28 }
 0x1e8   :  { %v56_v31 = vrot.slane %v55_v30, 1 }
 0x1ea   :  { %v57_v32 = vadd.f32 %v56_v31, %v55_v30 }
 0x1ec   :  { %77 = vpush %v57_v32 }
 0x21d   :  { %s78_s13 = spop %77 }
 0x21e   :  { %v60_v33 = vstv %s78_s13 }
 0x21f   :  { %62 = vst [vmem:[#allocation2] sm:$0xff] %v60_v33 }
 0x220   :  { %100 = shalt.err (!%p97_p4)
}
 0x221   :  { %72 = dma.vmem_to_hbm [thread:$0]  %s70_s1, 128, %s142_s2, [#allocation3]  }
 0x222   :  { %109 = dma.done.wait [#allocation3], 128  }
 0x223   :  { %110 = vsyncadd [#allocation3], 4294967168 }
 0x224   :  { %76 = vsyncpa [#allocation3], 1 }

</bundles_post_ra>
